<compile_context>
chip_gen: v6e
topology: v6e:2x2x1
jax: 0.10.0
libtpu: 0.0.40
codegen_flags: <defaults>
</compile_context>

<pallas_src>
import functools

import jax
import jax.numpy as jnp
from jax.experimental import pallas as pl
from jax.experimental.pallas import tpu as pltpu


def _round_up(x, m):
    return ((x + m - 1) // m) * m


def _style_mlp_kernel(x_ref, w_ref, b_ref, o_ref):
    # x_ref: [TB, F], w_ref: [F, O_pad], b_ref: [1, O_pad] (f32), o_ref: [TB, O_pad]
    acc = jnp.dot(x_ref[...], w_ref[...], preferred_element_type=jnp.float32)
    # Epilogue (bias add) in f32, single cast on store.
    o_ref[...] = (acc + b_ref[...]).astype(o_ref.dtype)


@functools.partial(
    jax.jit,
    static_argnames=("gamma_dim", "beta_dim", "omega_dim", "block_b", "compute_dtype"),
)
def style_mlp_forward(x, weight, bias, gamma_dim, beta_dim, omega_dim,
                      *, block_b=512, compute_dtype=None):
    """Forward pass of Style_MLP.

    x:      [B, feature_dim]
    weight: [out_dim, feature_dim]   (PyTorch nn.Linear layout)
    bias:   [out_dim]
    Returns (gamma [B, gamma_dim], beta [B, beta_dim], omega [B, omega_dim]).
    """
    B, F = x.shape
    O = gamma_dim + beta_dim + omega_dim
    assert weight.shape == (O, F)
    assert bias.shape == (O,)

    out_dtype = x.dtype
    if compute_dtype is None:
        compute_dtype = x.dtype

    # ---- lane-dense output: pad out_dim to a multiple of 128 ----------------
    O_pad = _round_up(O, 128)

    # ---- batch tiling: pick TB, pad B so TB divides it ----------------------
    tb = min(block_b, _round_up(B, 8))
    B_pad = _round_up(B, tb)

    # Pad / cast operands once in the (traced) wrapper.
    x_p = x
    if B_pad != B:
        x_p = jnp.pad(x_p, ((0, B_pad - B), (0, 0)))
    x_p = x_p.astype(compute_dtype)

    w_t = weight.T.astype(compute_dtype)                      # [F, O]
    if O_pad != O:
        w_t = jnp.pad(w_t, ((0, 0), (0, O_pad - O)))          # [F, O_pad]

    bias2d = bias.astype(jnp.float32).reshape(1, O)
    if O_pad != O:
        bias2d = jnp.pad(bias2d, ((0, 0), (0, O_pad - O)))    # [1, O_pad]

    grid = (B_pad // tb,)

    out = pl.pallas_call(
        _style_mlp_kernel,
        out_shape=jax.ShapeDtypeStruct((B_pad, O_pad), out_dtype),
        grid_spec=pl.GridSpec(
            grid=grid,
            in_specs=[
                # x: one batch tile per grid step (double-buffered by Pallas).
                pl.BlockSpec((tb, F), lambda i: (i, 0)),
                # weight / bias: full blocks, same block index every step.
                pl.BlockSpec((F, O_pad), lambda i: (0, 0)),
                pl.BlockSpec((1, O_pad), lambda i: (0, 0)),
            ],
            out_specs=pl.BlockSpec((tb, O_pad), lambda i: (i, 0)),
        ),
        compiler_params=pltpu.CompilerParams(
            dimension_semantics=("parallel",),
            vmem_limit_bytes=64 * 1024 * 1024,
        ),
    )(x_p, w_t, bias2d)

    # Strip padding and split channels (plain-JAX glue).
    gamma = out[:B, :gamma_dim]
    beta = out[:B, gamma_dim:gamma_dim + beta_dim]
    omega = out[:B, gamma_dim + beta_dim:gamma_dim + beta_dim + omega_dim]
    return gamma, beta, omega


if __name__ == "__main__":
    # Small shapes consistent with Style_MLP.forward (x: [batch, feature_dim]).
    batch = 8
    feature_dim = 32
    gamma_dim, beta_dim, omega_dim = 16, 16, 16
    out_dim = gamma_dim + beta_dim + omega_dim

    key = jax.random.PRNGKey(0)
    kx, kw, kb = jax.random.split(key, 3)

    x = jax.random.normal(kx, (batch, feature_dim), dtype=jnp.float32)
    # nn.Linear(feature_dim, out_dim) parameter layout: weight [out_dim, feature_dim].
    weight = jax.random.normal(kw, (out_dim, feature_dim), dtype=jnp.float32) * 0.05
    bias = jax.random.normal(kb, (out_dim,), dtype=jnp.float32) * 0.05

    # --- f32 path ------------------------------------------------------------
    gamma, beta, omega = style_mlp_forward(
        x, weight, bias, gamma_dim, beta_dim, omega_dim)
    jax.block_until_ready((gamma, beta, omega))

    ref = x @ weight.T + bias
    ref_g = ref[:, :gamma_dim]
    ref_b = ref[:, gamma_dim:gamma_dim + beta_dim]
    ref_o = ref[:, gamma_dim + beta_dim:]
    assert jnp.allclose(gamma, ref_g, atol=1e-5)
    assert jnp.allclose(beta, ref_b, atol=1e-5)
    assert jnp.allclose(omega, ref_o, atol=1e-5)

    # --- bf16-input path (f32 MXU accumulation), looser tolerance ------------
    g16, b16, o16 = style_mlp_forward(
        x, weight, bias, gamma_dim, beta_dim, omega_dim,
        compute_dtype=jnp.bfloat16)
    jax.block_until_ready((g16, b16, o16))
    assert jnp.allclose(g16, ref_g, atol=2e-2, rtol=2e-2)
    assert jnp.allclose(b16, ref_b, atol=2e-2, rtol=2e-2)
    assert jnp.allclose(o16, ref_o, atol=2e-2, rtol=2e-2)

    print("KERNEL_OK")
</pallas_src>

<mosaic_0001>
module attributes {stable_mosaic.version = 11 : i64} {
  func.func @_style_mlp_kernel(%arg0: i32, %arg1: memref<8x32xf32, #tpu.memory_space<vmem>>, %arg2: memref<32x128xf32, #tpu.memory_space<vmem>>, %arg3: memref<1x128xf32, #tpu.memory_space<vmem>>, %arg4: memref<8x128xf32, #tpu.memory_space<vmem>>) attributes {dimension_semantics = [#tpu.dimension_semantics<parallel>], iteration_bounds = array<i64: 1>, scalar_prefetch = 0 : i64, scratch_operands = 0 : i64, tpu.core_type = #tpu.core_type<tc>, window_params = [{transform_indices = @transform_0, window_bounds = array<i64: 8, 32>}, {pipeline_mode = #tpu.pipeline_mode<synchronous>, transform_indices = @transform_1, window_bounds = array<i64: 32, 128>}, {pipeline_mode = #tpu.pipeline_mode<synchronous>, transform_indices = @transform_2, window_bounds = array<i64: 1, 128>}, {transform_indices = @transform_3, window_bounds = array<i64: 8, 128>}]} {
    %c0 = arith.constant 0 : index
    %c0_0 = arith.constant 0 : index
    %0 = vector.load %arg1[%c0, %c0_0] : memref<8x32xf32, #tpu.memory_space<vmem>>, vector<8x32xf32>
    %c0_1 = arith.constant 0 : index
    %c0_2 = arith.constant 0 : index
    %1 = vector.load %arg2[%c0_1, %c0_2] : memref<32x128xf32, #tpu.memory_space<vmem>>, vector<32x128xf32>
    %cst = arith.constant dense<0.000000e+00> : vector<8x128xf32>
    %2 = tpu.matmul %0, %1, %cst {dimension_numbers = #tpu.dot_dimension_numbers<[1], [0], [0], [1], [0, 0, 1, 1], [], []>} : vector<8x32xf32>, vector<32x128xf32>, vector<8x128xf32> -> vector<8x128xf32>
    %c0_3 = arith.constant 0 : index
    %c0_4 = arith.constant 0 : index
    %3 = vector.load %arg3[%c0_3, %c0_4] : memref<1x128xf32, #tpu.memory_space<vmem>>, vector<1x128xf32>
    %4 = vector.broadcast %3 : vector<1x128xf32> to vector<8x128xf32>
    %5 = arith.addf %2, %4 : vector<8x128xf32>
    %c0_5 = arith.constant 0 : index
    %c0_6 = arith.constant 0 : index
    %6 = vector.load %arg4[%c0_5, %c0_6] : memref<8x128xf32, #tpu.memory_space<vmem>>, vector<8x128xf32>
    tpu.vector_store %arg4[%c0_5, %c0_6], %5 {strides = array<i32>} : memref<8x128xf32, #tpu.memory_space<vmem>>, vector<8x128xf32>,
    return
  }
  func.func @transform_0(%arg0: i32) -> (i32, i32) {
    %c0_i32 = arith.constant 0 : i32
    %c0_i32_0 = arith.constant 0 : i32
    return %arg0, %c0_i32 : i32, i32
  }
  func.func @transform_1(%arg0: i32) -> (i32, i32) {
    %c0_i32 = arith.constant 0 : i32
    %c0_i32_0 = arith.constant 0 : i32
    %c0_i32_1 = arith.constant 0 : i32
    return %c0_i32, %c0_i32_0 : i32, i32
  }
  func.func @transform_2(%arg0: i32) -> (i32, i32) {
    %c0_i32 = arith.constant 0 : i32
    %c0_i32_0 = arith.constant 0 : i32
    %c0_i32_1 = arith.constant 0 : i32
    return %c0_i32, %c0_i32_0 : i32, i32
  }
  func.func @transform_3(%arg0: i32) -> (i32, i32) {
    %c0_i32 = arith.constant 0 : i32
    %c0_i32_0 = arith.constant 0 : i32
    return %arg0, %c0_i32 : i32, i32
  }
}

</mosaic_0001>

<bundles_post_ra>
// kernel: style_mlp_forward.1
= control target key start
LH: loop header
LB: loop body
LE: loop exit
PB: predicated region body
PF: predicated region fallthrough
CT: control target
= control target key end

     0   :  { %v125_v0 = vmov 0.0   ;;  %vm126_vm0 = vmmov 0   ;;  %vm26_vm1 = vcmask 261120   ;;  %s168_s1 = inlined_call_operand.vmem [shape: f32[32,128], index: 1, kind: input, shape index: {}]   ;;  %s169_s0 = inlined_call_operand.vmem [shape: f32[8,32], index: 0, kind: input, shape index: {}]   ;;  %s170_s2 = inlined_call_operand.vmem [shape: f32[1,128], index: 2, kind: input, shape index: {}]   ;;  %s171_s3 = inlined_call_operand.vmem [shape: f32[8,128], index: 3, kind: output, shape index: {}]  }
   0x1   :  { %112 = vmatprep.subr.mxu0 %v125_v0  ;;  %v18_v1 = vld [vmem:[%s168_s1 + $0x18] sm:$0xff]  ;;  %v17_v2 = vld [vmem:[%s168_s1 + $0x10] sm:$0xff]  ;;  %120 = vmatprep.mubr.msk.f32.mxu0 %vm126_vm0, %v125_v0  ;;  %v16_v3 = vld [vmem:[%s168_s1 + $0x8] sm:$0xff] }
   0x2   :  { %113 = vmatpush3.msra.mxu0 %v18_v1  ;;  %v15_v4 = vld [vmem:[%s168_s1] sm:$0xff] }
   0x3   :  { %114 = vmatprep.subr.mxu0 %v125_v0  ;;  %v14_v5 = vld [vmem:[%s169_s0] sm:$0xff] }
   0x4   :  { %115 = vmatpush3.msra.mxu0 %v17_v2  ;;  %v105_v6 = vld [vmem:[%s170_s2] ss:$0 sm:$0xff] }
   0x5   :  { %116 = vmatprep.subr.mxu0 %v125_v0 }
   0x6   :  { %117 = vmatpush3.msra.mxu0 %v16_v3 }
   0x7   :  { %118 = vmatprep.subr.mxu0 %v125_v0 }
   0x8   :  { %119 = vmatpush3.msra.mxu0 %v15_v4 }
   0x9   :  { %121 = vmatmul.mubr.msk.f32.vlgmr.msra.gmra.mxu0 %vm26_vm1, %v14_v5 }
  0xc9   :  { %v96_v7 = vpop.f32.mrf.mxu0 }
  0xca   :  { %v97_v8 = vadd.f32 %v105_v6, %v96_v7 }
  0xcb   :  { %v122_v9 = vpop.f32.mrf.mxu0 }
  0xcc   :  { %100 = vst [vmem:[%s171_s3] sm:$0xff] %v97_v8 }

</bundles_post_ra>
